<compile_context>
chip_gen: v7x
topology: tpu7x:2x2x1
jax: 0.10.0
libtpu: 0.0.40
codegen_flags: <defaults>
</compile_context>

<pallas_src>
import functools

import jax
import jax.numpy as jnp
from jax.experimental import pallas as pl
from jax.experimental.pallas import tpu as pltpu

NEG_SLOPE = 0.2                       # self.sigma(0.2) -> nn.LeakyReLU(0.2)
VMEM_LIMIT_BYTES = 48 * 1024 * 1024   # safe on v7x (64 MiB) and v5e/v6e (128 MiB)


def _round_up(n, m):
    return ((n + m - 1) // m) * m


def _leaky(v):
    return jnp.where(v > 0, v, NEG_SLOPE * v)


def _make_icnn_grad_kernel(units):
    """Fused potential-forward + analytic d(sum potential)/dx.

    units = hidden_units + (1,);  L = len(units).
    Ref layout (all rank-2 VMEM tiles):
      x                       [TILE_B, D]      (blocked over batch)
      A_wT[0..L-2]            [D, H_i]         (forward orientation)
      W_wT[0..L-3]            [H_{i-1}, H_i]   (forward orientation)
      A_b [0..L-2]            [1, H_i]
      A_w [0..L-1]            [H_i, D]         (backward orientation)
      W_w [0..L-2]            [H_i, H_{i-1}]   (backward orientation)
      out                     [TILE_B, D]
    """
    L = len(units)

    def kernel(*refs):
        idx = 0
        x_ref = refs[idx]; idx += 1
        A_wT = refs[idx: idx + (L - 1)]; idx += L - 1
        W_wT = refs[idx: idx + (L - 2)]; idx += L - 2
        A_b = refs[idx: idx + (L - 1)]; idx += L - 1
        A_w = refs[idx: idx + L]; idx += L
        W_w = refs[idx: idx + (L - 1)]; idx += L - 1
        out_ref = refs[idx]

        x = x_ref[...]                                        # [B, D]
        B, D = x.shape

        # ---------------- forward (keep pre-activations for backward) -------
        a0 = jnp.dot(x, A_wT[0][...],
                     preferred_element_type=jnp.float32) + A_b[0][...]
        s0 = _leaky(a0)
        z = s0 * s0                                           # z0 = sigma(.)^2

        pre = []                                              # a_i, i=1..L-2
        for i in range(1, L - 1):
            a = (jnp.dot(z, W_wT[i - 1][...],
                         preferred_element_type=jnp.float32)
                 + jnp.dot(x, A_wT[i][...],
                           preferred_element_type=jnp.float32)
                 + A_b[i][...])                               # [B, H_i]
            pre.append(a)
            z = _leaky(a)
        # y = z @ W[-1].T + x @ A[-1].T + b[-1]  (value itself not needed)

        # ---------------- backward: d(sum y)/dx ------------------------------
        grad = jnp.broadcast_to(A_w[L - 1][...], (B, D))      # direct A[-1] path
        g = jnp.broadcast_to(W_w[L - 2][...], (B, units[L - 2]))

        for i in range(L - 2, 0, -1):
            p = pre[i - 1]
            da = jnp.where(p > 0, g, NEG_SLOPE * g)           # fused leaky'
            grad = grad + jnp.dot(da, A_w[i][...],
                                  preferred_element_type=jnp.float32)
            g = jnp.dot(da, W_w[i - 1][...],
                        preferred_element_type=jnp.float32)   # dL/dz_{i-1}

        # first layer: z0 = s0^2 with s0 = leaky(a0)
        ds0 = 2.0 * s0 * g
        da0 = jnp.where(a0 > 0, ds0, NEG_SLOPE * ds0)
        grad = grad + jnp.dot(da0, A_w[0][...],
                              preferred_element_type=jnp.float32)

        out_ref[...] = grad.astype(out_ref.dtype)

    return kernel


def _resident_spec(shape):
    """Grid-invariant operand: constant block index -> single VMEM buffer
    (double-buffering a never-changing block only wastes VMEM)."""
    index_map = lambda i: (0, 0)
    if hasattr(pl, "Buffered"):
        try:
            return pl.BlockSpec(shape, index_map, pipeline_mode=pl.Buffered(1))
        except TypeError:   # BlockSpec without pipeline_mode support
            pass
    return pl.BlockSpec(shape, index_map)


def pack_icnn_params(params, hidden_units):
    """One-time weight packing (hoisted out of the per-call wrapper): both
    matmul orientations plus 2-D biases, ready to feed the kernel directly."""
    A_ws, A_bs, W_ws = params
    L = len(hidden_units) + 1
    A_wT = tuple(jnp.asarray(w).T for w in A_ws[:L - 1])              # [D, H_i]
    W_wT = tuple(jnp.asarray(w).T for w in W_ws[:L - 2])              # [H_{i-1}, H_i]
    A_b = tuple(jnp.asarray(b).reshape(1, -1) for b in A_bs[:L - 1])  # [1, H_i]
    A_w = tuple(jnp.asarray(w) for w in A_ws)                         # [H_i, D]
    W_w = tuple(jnp.asarray(w) for w in W_ws)                         # [H_i, H_{i-1}]
    return (A_wT, W_wT, A_b, A_w, W_w)


def _pick_tile_b(B, D, itemsize):
    # Double-buffered x and out tiles should use at most ~1/3 of the VMEM budget.
    max_rows = max(8, ((VMEM_LIMIT_BYTES // 3) // (4 * D * itemsize)) // 8 * 8)
    tile_b = min(512, _round_up(B, 8), max_rows)
    # >=2 grid steps when the batch allows it, so the "parallel" batch axis can
    # split across both TensorCores on v7x (no effect on v5e/v6e: 1 TC).
    if B > 16 and pl.cdiv(B, tile_b) < 2:
        tile_b = min(tile_b, _round_up(pl.cdiv(B, 2), 8))
    return tile_b


@functools.partial(jax.jit, static_argnames=("hidden_units",))
def icnn_forward(x, packed_params, hidden_units):
    """forward(x) = grad_x sum(potential(x)).  x: [B, D] float32."""
    A_wT, W_wT, A_b, A_w, W_w = packed_params
    units = tuple(hidden_units) + (1,)

    B, D = x.shape
    tile_b = _pick_tile_b(B, D, x.dtype.itemsize)
    grid = (pl.cdiv(B, tile_b),)     # ragged final block handled by Pallas

    weight_inputs = list(A_wT) + list(W_wT) + list(A_b) + list(A_w) + list(W_w)
    inputs = [x] + weight_inputs

    # --- compile-time VMEM budget guard (weights are held fully resident) ----
    weight_bytes = sum(int(w.size) * w.dtype.itemsize for w in weight_inputs)
    io_bytes = 2 * 2 * tile_b * D * x.dtype.itemsize          # x + out, 2 bufs each
    act_bytes = tile_b * (2 * D + 4 * sum(units)) * 4         # rough live activations
    if weight_bytes + io_bytes + act_bytes > VMEM_LIMIT_BYTES:
        # TODO(synk): fall back to tiling the first/last layers over D for very
        # large input_dim / hidden sizes instead of fully-resident weights.
        raise ValueError("ICNN weights + activations exceed the VMEM budget; "
                         "reduce tile_b / hidden sizes or add D-tiling.")

    x_spec = pl.BlockSpec((tile_b, D), lambda i: (i, 0))
    out_spec = pl.BlockSpec((tile_b, D), lambda i: (i, 0))
    in_specs = [x_spec] + [_resident_spec(w.shape) for w in weight_inputs]

    return pl.pallas_call(
        _make_icnn_grad_kernel(units),
        out_shape=jax.ShapeDtypeStruct((B, D), jnp.float32),
        grid=grid,
        in_specs=in_specs,
        out_specs=out_spec,
        compiler_params=pltpu.CompilerParams(
            dimension_semantics=("parallel",),          # 2 TCs on v7x
            vmem_limit_bytes=VMEM_LIMIT_BYTES,
        ),
    )(*inputs)


# ------------------------- parameter construction ---------------------------
def init_icnn_params(key, input_dim, hidden_units):
    """Deterministic init.  softplus_W_kernels defaults to False in the
    PyTorch module, so W kernels are the raw weights."""
    units = list(hidden_units) + [1]
    L = len(units)
    keys = jax.random.split(key, 2 * L + (L - 1))
    ki = iter(keys)

    A_ws, A_bs, W_ws = [], [], []
    for odim in units:
        A_ws.append(0.1 * jax.random.normal(next(ki), (odim, input_dim),
                                            dtype=jnp.float32))
        A_bs.append(0.05 * jax.random.normal(next(ki), (1, odim),
                                             dtype=jnp.float32))
    for idim, odim in zip(units[:-1], units[1:]):
        W_ws.append(0.1 * jax.random.normal(next(ki), (odim, idim),
                                            dtype=jnp.float32))
    return A_ws, A_bs, W_ws


# ------------------------- pure-JAX reference (for checking) ----------------
def potential_ref(x, params, hidden_units):
    A_ws, A_bs, W_ws = params
    L = len(hidden_units) + 1
    z = _leaky(x @ A_ws[0].T + A_bs[0])
    z = z * z
    for i in range(1, L - 1):
        z = _leaky(z @ W_ws[i - 1].T + x @ A_ws[i].T + A_bs[i])
    y = z @ W_ws[L - 2].T + x @ A_ws[L - 1].T + A_bs[L - 1]
    return y


def forward_ref(x, params, hidden_units):
    return jax.grad(lambda xx: jnp.sum(potential_ref(xx, params,
                                                     hidden_units)))(x)


if __name__ == "__main__":
    key = jax.random.PRNGKey(0)
    k_x, k_x2, k_p = jax.random.split(key, 3)

    D = 16
    hidden_units = (32, 32)   # units = [32, 32, 1]
    params = init_icnn_params(k_p, D, hidden_units)
    packed = pack_icnn_params(params, hidden_units)   # one-time packing

    # --- small-batch check (single grid step) --------------------------------
    B = 8
    x = jax.random.normal(k_x, (B, D), dtype=jnp.float32)
    out = jax.block_until_ready(icnn_forward(x, packed, hidden_units))
    ref = forward_ref(x, params, hidden_units)
    assert out.shape == (B, D)
    assert jnp.allclose(out, ref, atol=1e-5, rtol=1e-5), (
        f"mismatch: max abs err {jnp.max(jnp.abs(out - ref))}")

    # --- ragged-grid check (batch not a tile multiple; masked final block) ---
    B2 = 37
    x2 = jax.random.normal(k_x2, (B2, D), dtype=jnp.float32)
    out2 = jax.block_until_ready(icnn_forward(x2, packed, hidden_units))
    ref2 = forward_ref(x2, params, hidden_units)
    assert out2.shape == (B2, D)
    assert jnp.allclose(out2, ref2, atol=1e-5, rtol=1e-5), (
        f"mismatch (ragged): max abs err {jnp.max(jnp.abs(out2 - ref2))}")

    # TODO(synk): softplus_W_kernels=True path (NonNegativeLinear) not
    # exercised; the default False path (raw W weights) is implemented.
    print("KERNEL_OK")
</pallas_src>

<mosaic_0001>
module attributes {stable_mosaic.version = 11 : i64} {
  func.func @kernel(%arg0: i32, %arg1: memref<8x16xf32, #tpu.memory_space<vmem>>, %arg2: memref<16x32xf32, #tpu.memory_space<vmem>>, %arg3: memref<16x32xf32, #tpu.memory_space<vmem>>, %arg4: memref<32x32xf32, #tpu.memory_space<vmem>>, %arg5: memref<1x32xf32, #tpu.memory_space<vmem>>, %arg6: memref<1x32xf32, #tpu.memory_space<vmem>>, %arg7: memref<32x16xf32, #tpu.memory_space<vmem>>, %arg8: memref<32x16xf32, #tpu.memory_space<vmem>>, %arg9: memref<1x16xf32, #tpu.memory_space<vmem>>, %arg10: memref<32x32xf32, #tpu.memory_space<vmem>>, %arg11: memref<1x32xf32, #tpu.memory_space<vmem>>, %arg12: memref<8x16xf32, #tpu.memory_space<vmem>>) attributes {dimension_semantics = [#tpu.dimension_semantics<parallel>], iteration_bounds = array<i64: 1>, scalar_prefetch = 0 : i64, scratch_operands = 0 : i64, tpu.core_type = #tpu.core_type<tc>, window_params = [{transform_indices = @transform_0, window_bounds = array<i64: 8, 16>}, {pipeline_mode = #tpu.pipeline_mode<synchronous>, transform_indices = @transform_1, window_bounds = array<i64: 16, 32>}, {pipeline_mode = #tpu.pipeline_mode<synchronous>, transform_indices = @transform_2, window_bounds = array<i64: 16, 32>}, {pipeline_mode = #tpu.pipeline_mode<synchronous>, transform_indices = @transform_3, window_bounds = array<i64: 32, 32>}, {pipeline_mode = #tpu.pipeline_mode<synchronous>, transform_indices = @transform_4, window_bounds = array<i64: 1, 32>}, {pipeline_mode = #tpu.pipeline_mode<synchronous>, transform_indices = @transform_5, window_bounds = array<i64: 1, 32>}, {pipeline_mode = #tpu.pipeline_mode<synchronous>, transform_indices = @transform_6, window_bounds = array<i64: 32, 16>}, {pipeline_mode = #tpu.pipeline_mode<synchronous>, transform_indices = @transform_7, window_bounds = array<i64: 32, 16>}, {pipeline_mode = #tpu.pipeline_mode<synchronous>, transform_indices = @transform_8, window_bounds = array<i64: 1, 16>}, {pipeline_mode = #tpu.pipeline_mode<synchronous>, transform_indices = @transform_9, window_bounds = array<i64: 32, 32>}, {pipeline_mode = #tpu.pipeline_mode<synchronous>, transform_indices = @transform_10, window_bounds = array<i64: 1, 32>}, {transform_indices = @transform_11, window_bounds = array<i64: 8, 16>}]} {
    %c0 = arith.constant 0 : index
    %c0_0 = arith.constant 0 : index
    %0 = vector.load %arg1[%c0, %c0_0] : memref<8x16xf32, #tpu.memory_space<vmem>>, vector<8x16xf32>
    %c0_1 = arith.constant 0 : index
    %c0_2 = arith.constant 0 : index
    %1 = vector.load %arg2[%c0_1, %c0_2] : memref<16x32xf32, #tpu.memory_space<vmem>>, vector<16x32xf32>
    %cst = arith.constant dense<0.000000e+00> : vector<8x32xf32>
    %2 = tpu.matmul %0, %1, %cst {dimension_numbers = #tpu.dot_dimension_numbers<[1], [0], [0], [1], [0, 0, 1, 1], [], []>} : vector<8x16xf32>, vector<16x32xf32>, vector<8x32xf32> -> vector<8x32xf32>
    %c0_3 = arith.constant 0 : index
    %c0_4 = arith.constant 0 : index
    %3 = vector.load %arg5[%c0_3, %c0_4] : memref<1x32xf32, #tpu.memory_space<vmem>>, vector<1x32xf32>
    %4 = vector.broadcast %3 : vector<1x32xf32> to vector<8x32xf32>
    %5 = arith.addf %2, %4 : vector<8x32xf32>
    %cst_5 = arith.constant 0.000000e+00 : f32
    %6 = vector.broadcast %cst_5 : f32 to vector<8x32xf32>
    %7 = arith.cmpf ogt, %5, %6 : vector<8x32xf32>
    %cst_6 = arith.constant 2.000000e-01 : f32
    %8 = vector.broadcast %cst_6 : f32 to vector<8x32xf32>
    %9 = arith.mulf %8, %5 : vector<8x32xf32>
    %10 = arith.select %7, %5, %9 : vector<8x32xi1>, vector<8x32xf32>
    %11 = arith.mulf %10, %10 : vector<8x32xf32>
    %c0_7 = arith.constant 0 : index
    %c0_8 = arith.constant 0 : index
    %12 = vector.load %arg4[%c0_7, %c0_8] : memref<32x32xf32, #tpu.memory_space<vmem>>, vector<32x32xf32>
    %cst_9 = arith.constant dense<0.000000e+00> : vector<8x32xf32>
    %13 = tpu.matmul %11, %12, %cst_9 {dimension_numbers = #tpu.dot_dimension_numbers<[1], [0], [0], [1], [0, 0, 1, 1], [], []>} : vector<8x32xf32>, vector<32x32xf32>, vector<8x32xf32> -> vector<8x32xf32>
    %c0_10 = arith.constant 0 : index
    %c0_11 = arith.constant 0 : index
    %14 = vector.load %arg3[%c0_10, %c0_11] : memref<16x32xf32, #tpu.memory_space<vmem>>, vector<16x32xf32>
    %cst_12 = arith.constant dense<0.000000e+00> : vector<8x32xf32>
    %15 = tpu.matmul %0, %14, %cst_12 {dimension_numbers = #tpu.dot_dimension_numbers<[1], [0], [0], [1], [0, 0, 1, 1], [], []>} : vector<8x16xf32>, vector<16x32xf32>, vector<8x32xf32> -> vector<8x32xf32>
    %16 = arith.addf %13, %15 : vector<8x32xf32>
    %c0_13 = arith.constant 0 : index
    %c0_14 = arith.constant 0 : index
    %17 = vector.load %arg6[%c0_13, %c0_14] : memref<1x32xf32, #tpu.memory_space<vmem>>, vector<1x32xf32>
    %18 = vector.broadcast %17 : vector<1x32xf32> to vector<8x32xf32>
    %19 = arith.addf %16, %18 : vector<8x32xf32>
    %c0_15 = arith.constant 0 : index
    %c0_16 = arith.constant 0 : index
    %20 = vector.load %arg9[%c0_15, %c0_16] : memref<1x16xf32, #tpu.memory_space<vmem>>, vector<1x16xf32>
    %21 = vector.shape_cast %20 : vector<1x16xf32> to vector<1x16xf32>
    %22 = vector.broadcast %21 : vector<1x16xf32> to vector<8x16xf32>
    %c0_17 = arith.constant 0 : index
    %c0_18 = arith.constant 0 : index
    %23 = vector.load %arg11[%c0_17, %c0_18] : memref<1x32xf32, #tpu.memory_space<vmem>>, vector<1x32xf32>
    %24 = vector.shape_cast %23 : vector<1x32xf32> to vector<1x32xf32>
    %25 = vector.broadcast %24 : vector<1x32xf32> to vector<8x32xf32>
    %cst_19 = arith.constant 0.000000e+00 : f32
    %26 = vector.broadcast %cst_19 : f32 to vector<8x32xf32>
    %27 = arith.cmpf ogt, %19, %26 : vector<8x32xf32>
    %cst_20 = arith.constant 2.000000e-01 : f32
    %28 = vector.broadcast %cst_20 : f32 to vector<8x32xf32>
    %29 = arith.mulf %28, %25 : vector<8x32xf32>
    %30 = arith.select %27, %25, %29 : vector<8x32xi1>, vector<8x32xf32>
    %c0_21 = arith.constant 0 : index
    %c0_22 = arith.constant 0 : index
    %31 = vector.load %arg8[%c0_21, %c0_22] : memref<32x16xf32, #tpu.memory_space<vmem>>, vector<32x16xf32>
    %cst_23 = arith.constant dense<0.000000e+00> : vector<8x16xf32>
    %32 = tpu.matmul %30, %31, %cst_23 {dimension_numbers = #tpu.dot_dimension_numbers<[1], [0], [0], [1], [0, 0, 1, 1], [], []>} : vector<8x32xf32>, vector<32x16xf32>, vector<8x16xf32> -> vector<8x16xf32>
    %33 = arith.addf %22, %32 : vector<8x16xf32>
    %c0_24 = arith.constant 0 : index
    %c0_25 = arith.constant 0 : index
    %34 = vector.load %arg10[%c0_24, %c0_25] : memref<32x32xf32, #tpu.memory_space<vmem>>, vector<32x32xf32>
    %cst_26 = arith.constant dense<0.000000e+00> : vector<8x32xf32>
    %35 = tpu.matmul %30, %34, %cst_26 {dimension_numbers = #tpu.dot_dimension_numbers<[1], [0], [0], [1], [0, 0, 1, 1], [], []>} : vector<8x32xf32>, vector<32x32xf32>, vector<8x32xf32> -> vector<8x32xf32>
    %cst_27 = arith.constant 2.000000e+00 : f32
    %36 = vector.broadcast %cst_27 : f32 to vector<8x32xf32>
    %37 = arith.mulf %36, %10 : vector<8x32xf32>
    %38 = arith.mulf %37, %35 : vector<8x32xf32>
    %cst_28 = arith.constant 0.000000e+00 : f32
    %39 = vector.broadcast %cst_28 : f32 to vector<8x32xf32>
    %40 = arith.cmpf ogt, %5, %39 : vector<8x32xf32>
    %cst_29 = arith.constant 2.000000e-01 : f32
    %41 = vector.broadcast %cst_29 : f32 to vector<8x32xf32>
    %42 = arith.mulf %41, %38 : vector<8x32xf32>
    %43 = arith.select %40, %38, %42 : vector<8x32xi1>, vector<8x32xf32>
    %c0_30 = arith.constant 0 : index
    %c0_31 = arith.constant 0 : index
    %44 = vector.load %arg7[%c0_30, %c0_31] : memref<32x16xf32, #tpu.memory_space<vmem>>, vector<32x16xf32>
    %cst_32 = arith.constant dense<0.000000e+00> : vector<8x16xf32>
    %45 = tpu.matmul %43, %44, %cst_32 {dimension_numbers = #tpu.dot_dimension_numbers<[1], [0], [0], [1], [0, 0, 1, 1], [], []>} : vector<8x32xf32>, vector<32x16xf32>, vector<8x16xf32> -> vector<8x16xf32>
    %46 = arith.addf %33, %45 : vector<8x16xf32>
    %c0_33 = arith.constant 0 : index
    %c0_34 = arith.constant 0 : index
    %47 = vector.load %arg12[%c0_33, %c0_34] : memref<8x16xf32, #tpu.memory_space<vmem>>, vector<8x16xf32>
    tpu.vector_store %arg12[%c0_33, %c0_34], %46 {strides = array<i32>} : memref<8x16xf32, #tpu.memory_space<vmem>>, vector<8x16xf32>,
    return
  }
  func.func @transform_0(%arg0: i32) -> (i32, i32) {
    %c0_i32 = arith.constant 0 : i32
    %c0_i32_0 = arith.constant 0 : i32
    return %arg0, %c0_i32 : i32, i32
  }
  func.func @transform_1(%arg0: i32) -> (i32, i32) {
    %c0_i32 = arith.constant 0 : i32
    %c0_i32_0 = arith.constant 0 : i32
    %c0_i32_1 = arith.constant 0 : i32
    return %c0_i32, %c0_i32_0 : i32, i32
  }
  func.func @transform_2(%arg0: i32) -> (i32, i32) {
    %c0_i32 = arith.constant 0 : i32
    %c0_i32_0 = arith.constant 0 : i32
    %c0_i32_1 = arith.constant 0 : i32
    return %c0_i32, %c0_i32_0 : i32, i32
  }
  func.func @transform_3(%arg0: i32) -> (i32, i32) {
    %c0_i32 = arith.constant 0 : i32
    %c0_i32_0 = arith.constant 0 : i32
    %c0_i32_1 = arith.constant 0 : i32
    return %c0_i32, %c0_i32_0 : i32, i32
  }
  func.func @transform_4(%arg0: i32) -> (i32, i32) {
    %c0_i32 = arith.constant 0 : i32
    %c0_i32_0 = arith.constant 0 : i32
    %c0_i32_1 = arith.constant 0 : i32
    return %c0_i32, %c0_i32_0 : i32, i32
  }
  func.func @transform_5(%arg0: i32) -> (i32, i32) {
    %c0_i32 = arith.constant 0 : i32
    %c0_i32_0 = arith.constant 0 : i32
    %c0_i32_1 = arith.constant 0 : i32
    return %c0_i32, %c0_i32_0 : i32, i32
  }
  func.func @transform_6(%arg0: i32) -> (i32, i32) {
    %c0_i32 = arith.constant 0 : i32
    %c0_i32_0 = arith.constant 0 : i32
    %c0_i32_1 = arith.constant 0 : i32
    return %c0_i32, %c0_i32_0 : i32, i32
  }
  func.func @transform_7(%arg0: i32) -> (i32, i32) {
    %c0_i32 = arith.constant 0 : i32
    %c0_i32_0 = arith.constant 0 : i32
    %c0_i32_1 = arith.constant 0 : i32
    return %c0_i32, %c0_i32_0 : i32, i32
  }
  func.func @transform_8(%arg0: i32) -> (i32, i32) {
    %c0_i32 = arith.constant 0 : i32
    %c0_i32_0 = arith.constant 0 : i32
    %c0_i32_1 = arith.constant 0 : i32
    return %c0_i32, %c0_i32_0 : i32, i32
  }
  func.func @transform_9(%arg0: i32) -> (i32, i32) {
    %c0_i32 = arith.constant 0 : i32
    %c0_i32_0 = arith.constant 0 : i32
    %c0_i32_1 = arith.constant 0 : i32
    return %c0_i32, %c0_i32_0 : i32, i32
  }
  func.func @transform_10(%arg0: i32) -> (i32, i32) {
    %c0_i32 = arith.constant 0 : i32
    %c0_i32_0 = arith.constant 0 : i32
    %c0_i32_1 = arith.constant 0 : i32
    return %c0_i32, %c0_i32_0 : i32, i32
  }
  func.func @transform_11(%arg0: i32) -> (i32, i32) {
    %c0_i32 = arith.constant 0 : i32
    %c0_i32_0 = arith.constant 0 : i32
    return %arg0, %c0_i32 : i32, i32
  }
}

</mosaic_0001>

<bundles_post_ra>
// kernel: icnn_forward.1
= control target key start
LH: loop header
LB: loop body
LE: loop exit
PB: predicated region body
PF: predicated region fallthrough
CT: control target
= control target key end

     0   :  { %16 = vsyncpa [#allocation3], 0  ;;  %s994_s0 = inlined_call_operand.hbm [shape: f32[8,16], index: 0, kind: input, shape index: {}]   ;;  %s995_s1 = inlined_call_operand.vmem [shape: f32[16,32], index: 1, kind: input, shape index: {}]   ;;  %s996_s2 = inlined_call_operand.hbm [shape: f32[16,32], index: 2, kind: input, shape index: {}]   ;;  %s997_s3 = inlined_call_operand.vmem [shape: f32[32,32], index: 3, kind: input, shape index: {}]   ;;  %s998_s4 = inlined_call_operand.vmem [shape: f32[1,32], index: 4, kind: input, shape index: {}]   ;;  %s999_s5 = inlined_call_operand.vmem [shape: f32[1,32], index: 5, kind: input, shape index: {}]   ;;  %s1000_s6 = inlined_call_operand.vmem [shape: f32[32,16], index: 6, kind: input, shape index: {}]   ;;  %s1001_s7 = inlined_call_operand.vmem [shape: f32[32,16], index: 7, kind: input, shape index: {}]   ;;  %s1002_s8 = inlined_call_operand.vmem [shape: f32[1,16], index: 8, kind: input, shape index: {}]   ;;  %s1003_s9 = inlined_call_operand.vmem [shape: f32[32,32], index: 9, kind: input, shape index: {}]   ;;  %s1004_s10 = inlined_call_operand.vmem [shape: f32[1,32], index: 10, kind: input, shape index: {}]   ;;  %s1005_s11 = inlined_call_operand.hbm [shape: f32[8,16], index: 11, kind: output, shape index: {}]  }
   0x1   :  { %17 = vsyncpa [#allocation6], 0 }
   0x2   :  { %18 = vsyncpa [#allocation4], 0  ;;  %s786_s17 = smov [#allocation2]   ;;  %s787_s19 = smov [#allocation5]  }
   0x3   :  { %s25_s18 = sshll.u32 %s786_s17, 4  ;;  %s36_s20 = sshll.u32 %s787_s19, 4  ;;  %s26_s18 = int_to_ptr.vmem [resolvable:$true] %s25_s18  ;;  %s854_s20 = int_to_ptr.vmem [resolvable:$true] %s36_s20 }
   0x4   :  { %s714_s23 = scalar_lea.hbm %s994_s0, 128 }
   0x5   :  { %p715_p0 = scmp.ne.s32.totalorder %s994_s0, %s714_s23  ;;  %p718_p1 = scmp.lt.u32.totalorder %s714_s23, %s994_s0 }
   0x7   :  { %p720_p2 = pnand %p718_p1, %p715_p0 }
   0x9   :  { %723 = shalt.err (!%p720_p2)
}
   0xa   :  { %s724_s28 = scalar_lea.vmem %s26_s18, 128  ;;  %p729_p4 = scmp.lt.s32.totalorder %s26_s18, %s26_s18 }
   0xb   :  { %p725_p3 = scmp.ne.s32.totalorder %s26_s18, %s724_s28  ;;  %p730_p5 = scmp.lt.s32.totalorder %s724_s28, %s724_s28 }
   0xd   :  { %p731_p6 = por %p730_p5, %p729_p4 }
   0xf   :  { %p732_p7 = pnand %p731_p6, %p725_p3 }
  0x11   :  { %735 = shalt.err (!%p732_p7)
}
  0x12   :  { %28 = dma.hbm_to_vmem [thread:$0]  %s994_s0, 128, %s26_s18, [#allocation3]  }
  0x13   :  { %s736_s14 = scalar_lea.hbm %s996_s2, 256 }
  0x14   :  { %p737_p8 = scmp.ne.s32.totalorder %s996_s2, %s736_s14  ;;  %p740_p9 = scmp.lt.u32.totalorder %s736_s14, %s996_s2 }
  0x16   :  { %p742_p10 = pnand %p740_p9, %p737_p8 }
  0x18   :  { %745 = shalt.err (!%p742_p10)
}
  0x19   :  { %s746_s21 = scalar_lea.vmem %s854_s20, 256  ;;  %p751_p12 = scmp.lt.s32.totalorder %s854_s20, %s854_s20 }
  0x1a   :  { %p747_p11 = scmp.ne.s32.totalorder %s854_s20, %s746_s21  ;;  %p752_p13 = scmp.lt.s32.totalorder %s746_s21, %s746_s21 }
  0x1c   :  { %p753_p0 = por %p752_p13, %p751_p12 }
  0x1e   :  { %p754_p1 = pnand %p753_p0, %p747_p11 }
  0x20   :  { %757 = shalt.err (!%p754_p1)
}
  0x21   :  { %s788_s0 = smov 128   ;;  %s789_s18 = smov 8  }
  0x22   :  { %42 = dma.hbm_to_vmem [thread:$0]  %s996_s2, 256, %s854_s20, [#allocation6], %s788_s0, %s788_s0, %s789_s18  }
  0x23   :  { %780 = dma.done.wait [#allocation3], 128  }
  0x24   :  { %781 = vsyncadd [#allocation3], 4294967168 }
  0x25   :  { %782 = dma.done.wait [#allocation6], 256  }
  0x26   :  { %783 = vsyncadd [#allocation6], 4294967040  ;;  %v790_v0 = vmov 0.0|0.0   ;;  %vm791_vm0 = vmmov 0   ;;  %v792_v1 = vmov 0.0   ;;  %v66_v2 = vld [vmem:[%s995_s1] sm:$0xff] }
  0x27   :  { %673 = vmatprep.subr.bf16.mxu0 %v790_v0  ;;  %619 = vmatprep.mubr.msk.f32.mxu0 %vm791_vm0, %v792_v1  ;;  %v67_v3 = vld [vmem:[%s995_s1 + $0x8] sm:$0xff]  ;;  %v65_v5 = vld [vmem:[#allocation2] sm:$0xff]  ;;  %vm75_vm1 = vcmask 130048   ;;  %v158_v10 = vld [vmem:[#allocation5 + $0x8] sm:$0xff]  ;;  %vm229_vm3 = vcmask 261120   ;;  %s793_s17 = smov [#allocation7]  }
  0x28   :  { %676 = vmatprep.subr.bf16.mxu1 %v790_v0  ;;  %626 = vmatprep.mubr.msk.f32.mxu1 %vm791_vm0, %v792_v1  ;;  %v674_v4 = vpack.c.bf16 %v67_v3, %v66_v2  ;;  %v153_v6 = vld [vmem:[%s997_s3] sm:$0xff]  ;;  %v154_v7 = vld [vmem:[%s997_s3 + $0x8] sm:$0xff]  ;;  %v155_v12 = vld [vmem:[%s997_s3 + $0x10] sm:$0xff] }
  0x29   :  { %v680_v8 = vpack.c.bf16 %v154_v7, %v153_v6  ;;  %v157_v9 = vld [vmem:[#allocation5] sm:$0xff]  ;;  %v156_v13 = vld [vmem:[%s997_s3 + $0x18] sm:$0xff]  ;;  %v579_v15 = vld [vmem:[%s998_s4] ss:$0 sm:$0xff]  ;;  %s569_s4 = sshll.u32 %s793_s17, 4  ;;  %s570_s4 = int_to_ptr.vmem [resolvable:$true] %s569_s4 }
  0x2a   :  { %675 = vmatpush3.bf16.msra.mxu0 %v674_v4  ;;  %v677_v11 = vpack.c.bf16 %v158_v10, %v157_v9  ;;  %v683_v14 = vpack.c.bf16 %v156_v13, %v155_v12  ;;  %v328_v22 = vld [vmem:[%s1001_s7] sm:$0xff]  ;;  %v329_v23 = vld [vmem:[%s1001_s7 + $0x8] sm:$0xff]  ;;  %v330_v30 = vld [vmem:[%s1001_s7 + $0x10] sm:$0xff]  ;;  %p763_p3 = scmp.lt.s32.totalorder %s570_s4, %s570_s4 }
  0x2b   :  { %679 = vmatprep.subr.bf16.mxu0 %v790_v0  ;;  %v406_v24 = vld [vmem:[%s1003_s9] sm:$0xff]  ;;  %v686_v25 = vpack.c.bf16 %v329_v23, %v328_v22  ;;  %v407_v26 = vld [vmem:[%s1003_s9 + $0x8] sm:$0xff]  ;;  %v331_v31 = vld [vmem:[%s1001_s7 + $0x18] sm:$0xff] }
  0x2c   :  { %678 = vmatpush3.bf16.msra.mxu1 %v677_v11  ;;  %v692_v28 = vpack.c.bf16 %v407_v26, %v406_v24  ;;  %v689_v32 = vpack.c.bf16 %v331_v31, %v330_v30  ;;  %v408_v33 = vld [vmem:[%s1003_s9 + $0x10] sm:$0xff]  ;;  %v409_v34 = vld [vmem:[%s1003_s9 + $0x18] sm:$0xff]  ;;  %v585_v36 = vld [vmem:[%s1004_s10] ss:$0 sm:$0xff] }
  0x2d   :  { %620 = vmatmul.mubr.msk.f32.vlgmr.msra.gmra.mrb[0].mxu0 %vm75_vm1, %v65_v5  ;;  %685 = vmatprep.subr.bf16.mxu1 %v790_v0  ;;  %v695_v35 = vpack.c.bf16 %v409_v34, %v408_v33  ;;  %v583_v38 = vld [vmem:[%s999_s5] ss:$0 sm:$0xff]  ;;  %v485_v42 = vld [vmem:[%s1000_s6 + $0x8] sm:$0xff]  ;;  %v326_v43 = vmul.f32 0.2, %v585_v36  ;;  %v486_v47 = vld [vmem:[%s1000_s6 + $0x10] sm:$0xff] }
  0x2e   :  { %637 = vmatprep.mubr.msk.f32.mxu0 %vm791_vm0, %v792_v1  ;;  %681 = vmatpush3.bf16.msra.mxu0 %v680_v8  ;;  %v484_v41 = vld [vmem:[%s1000_s6] sm:$0xff]  ;;  %v487_v48 = vld [vmem:[%s1000_s6 + $0x18] sm:$0xff]  ;;  %s758_s6 = scalar_lea.vmem %s570_s4, 128 }
  0x2f   :  { %682 = vmatprep.subr.bf16.mxu0 %v790_v0  ;;  %627 = vmatmul.mubr.msk.f32.vlgmr.msra.gmra.mrb[0].mxu1 %vm75_vm1, %v65_v5  ;;  %v698_v45 = vpack.c.bf16 %v485_v42, %v484_v41  ;;  %v701_v49 = vpack.c.bf16 %v487_v48, %v486_v47  ;;  %v584_v56 = vld [vmem:[%s1002_s8] ss:$0 sm:$0xff]  ;;  %p759_p2 = scmp.ne.s32.totalorder %s570_s4, %s758_s6  ;;  %p764_p4 = scmp.lt.s32.totalorder %s758_s6, %s758_s6 }
  0x30   :  { %648 = vmatprep.mubr.msk.f32.mxu1 %vm791_vm0, %v792_v1  ;;  %687 = vmatpush3.bf16.msra.mxu1 %v686_v25 }
  0x31   :  { %688 = vmatprep.subr.bf16.mxu1 %v790_v0  ;;  %p765_p5 = por %p764_p4, %p763_p3 }
  0x32   :  { %684 = vmatpush3.bf16.msra.mxu0 %v683_v14 }
  0x33   :  { %691 = vmatprep.subr.bf16.mxu0 %v790_v0  ;;  %p766_p6 = pnand %p765_p5, %p759_p2 }
  0x34   :  { %690 = vmatpush3.bf16.msra.mxu1 %v689_v32 }
  0x35   :  { %697 = vmatprep.subr.bf16.mxu1 %v790_v0 }
 0x100   :  { %v145_v16 = vpop.f32.mrb[0].mxu0 }
 0x101   :  { %v146_v17 = vadd.f32 %v579_v15, %v145_v16  ;;  %v621_v18 = vpop.f32.mrb[1].mxu0 }
 0x102   :  { %v225_v27 = vpop.f32.mrb[0].mxu1 }
 0x103   :  { %vm149_vm2 = vcmp.gt.f32.partialorder %v146_v17, 0.0  ;;  %v150_v19 = vmul.f32 0.2, %v146_v17  ;;  %v628_v29 = vpop.f32.mrb[1].mxu1 }
 0x105   :  { %v151_v20 = vsel %vm149_vm2, %v146_v17, %v150_v19 }
 0x106   :  { %v152_v21 = vmul.f32 %v151_v20, %v151_v20  ;;  %v480_v50 = vmul.f32 2.0, %v151_v20 }
 0x108   :  { %638 = vmatmul.mubr.msk.f32.vlgmr.msra.gmra.mrb[2].mxu0 %vm229_vm3, %v152_v21 }
 0x109   :  { %659 = vmatprep.mubr.msk.f32.mxu0 %vm791_vm0, %v792_v1  ;;  %693 = vmatpush3.bf16.msra.mxu0 %v692_v28 }
 0x10a   :  { %694 = vmatprep.subr.bf16.mxu0 %v790_v0 }
 0x10d   :  { %696 = vmatpush3.bf16.msra.mxu0 %v695_v35 }
 0x1db   :  { %v299_v37 = vpop.f32.mrb[2].mxu0 }
 0x1dc   :  { %v300_v39 = vadd.f32 %v299_v37, %v225_v27  ;;  %v639_v40 = vpop.f32.mrb[3].mxu0 }
 0x1de   :  { %v310_v44 = vadd.f32 %v583_v38, %v300_v39 }
 0x1e0   :  { %vm325_vm4 = vcmp.gt.f32.partialorder %v310_v44, 0.0 }
 0x1e1   :  { %v327_v46 = vsel %vm325_vm4, %v585_v36, %v326_v43 }
 0x1e2   :  { %649 = vmatmul.mubr.msk.f32.vlgmr.msra.gmra.mrb[2].mxu1 %vm229_vm3, %v327_v46  ;;  %660 = vmatmul.mubr.msk.f32.vlgmr.msra.gmra.mrb[4].mxu0 %vm229_vm3, %v327_v46 }
 0x1e3   :  { %699 = vmatpush3.bf16.msra.mxu1 %v698_v45  ;;  %670 = vmatprep.mubr.msk.f32.mxu1 %vm791_vm0, %v792_v1 }
 0x1e4   :  { %700 = vmatprep.subr.bf16.mxu1 %v790_v0 }
 0x1e7   :  { %702 = vmatpush3.bf16.msra.mxu1 %v701_v49 }
 0x2b5   :  { %v476_v51 = vpop.f32.mrb[4].mxu0 }
 0x2b6   :  { %v481_v52 = vmul.f32 %v480_v50, %v476_v51  ;;  %v661_v53 = vpop.f32.mrb[5].mxu0 }
 0x2b8   :  { %v482_v54 = vmul.f32 0.2, %v481_v52 }
 0x2ba   :  { %v483_v55 = vsel %vm149_vm2, %v481_v52, %v482_v54 }
 0x2bb   :  { %671 = vmatmul.mubr.msk.f32.vlgmr.msra.gmra.mrb[2].mxu1 %vm229_vm3, %v483_v55 }
 0x38e   :  { %v557_v57 = vpop.f32.mrb[2].mxu1 }
 0x38f   :  { %v703_v58 = vadd.f32 %v584_v56, %v557_v57  ;;  %v672_v59 = vpop.f32.mrb[3].mxu1 }
 0x391   :  { %562 = vst.msk [vmem:[#allocation7] sm:$0xff] %vm75_vm1, %v703_v58 }
 0x392   :  { %769 = shalt.err (!%p766_p6)
}
 0x393   :  { %s770_s0 = scalar_lea.hbm %s1005_s11, 128 }
 0x394   :  { %p771_p7 = scmp.ne.s32.totalorder %s1005_s11, %s770_s0  ;;  %p774_p8 = scmp.lt.u32.totalorder %s770_s0, %s1005_s11 }
 0x396   :  { %p776_p9 = pnand %p774_p8, %p771_p7 }
 0x398   :  { %779 = shalt.err (!%p776_p9)
}
 0x399   :  { %572 = dma.vmem_to_hbm [thread:$0]  %s570_s4, 128, %s1005_s11, [#allocation4]  }
 0x39a   :  { %784 = dma.done.wait [#allocation4], 128  }
 0x39b   :  { %785 = vsyncadd [#allocation4], 4294967168 }
 0x39c   :  { %576 = vsyncpa [#allocation3], 1 }
 0x39d   :  { %577 = vsyncpa [#allocation6], 1 }
 0x39e   :  { %578 = vsyncpa [#allocation4], 1 }

</bundles_post_ra>
